<compile_context>
chip_gen: v5e
topology: v5e:2x2
jax: 0.10.0
libtpu: 0.0.40
codegen_flags: <defaults>
</compile_context>

<pallas_src>
import functools
import math

import jax
import jax.numpy as jnp
from jax.experimental import pallas as pl
from jax.experimental.pallas import tpu as pltpu


def _round_up(a, b):
    return ((a + b - 1) // b) * b


def label_smoothing_kernel(x_ref, tgt_ref, out_ref, acc_ref, *,
                           smooth_val, confidence, c_const, padding_idx):
    i = pl.program_id(0)
    nsteps = pl.num_programs(0)

    @pl.when(i == 0)
    def _():
        acc_ref[...] = jnp.zeros_like(acc_ref)
        out_ref[...] = jnp.zeros_like(out_ref)

    x = x_ref[...].astype(jnp.float32)   # (tm, V) log-probabilities
    tgt = tgt_ref[...]                   # (tm, 1) int32 target indices
    tm, v = x.shape

    cols = jax.lax.broadcasted_iota(jnp.int32, (tm, v), 1)
    row_valid = tgt != padding_idx                      # (tm, 1)
    tgt_mask = (cols == tgt) & row_valid                # one lane per valid row
    smooth_mask = row_valid & (cols != padding_idx)     # all non-pad cols, valid rows

    # Per valid row the loss collapses to
    #   C + (smooth_val - confidence) * x[tgt] - smooth_val * (rowsum(x) - x[pad])
    # with C = confidence*log(confidence) + smoothing*log(smooth_val) folded at
    # trace time. Realized as two masked elementwise terms (no log, no gather).
    tgt_term = jnp.where(tgt_mask, c_const + (smooth_val - confidence) * x, 0.0)
    smooth_term = jnp.where(smooth_mask, -smooth_val * x, 0.0)
    contrib = tgt_term + smooth_term                    # (tm, V)

    # Per-step partial reduction only along sublanes; keep lanes dense.
    acc_ref[...] += jnp.sum(contrib, axis=0, keepdims=True)   # (1, V)

    @pl.when(i == nsteps - 1)
    def _():
        out_ref[...] = jnp.sum(acc_ref[...]).reshape(1, 1)


def label_smoothing_loss(x, target, *, padding_idx, smoothing, tm=256):
    """Pallas implementation of LabelSmoothing.forward (returns scalar loss).

    Note: like the reference module, assumes V > 2 (smoothing / (V - 2)).
    """
    n, v = x.shape
    confidence = 1.0 - smoothing
    smooth_val = smoothing / (v - 2)

    # Constant-folded:  confidence*log(confidence) + smoothing*log(smooth_val)
    c_const = 0.0
    if confidence > 0.0:
        c_const += confidence * math.log(confidence)
    if smoothing > 0.0:
        c_const += smoothing * math.log(smooth_val)

    # Tile rows: big tiles for throughput, clamped so tiny inputs stay tiny.
    tm = max(8, min(_round_up(tm, 8), _round_up(n, 8)))
    n_pad = _round_up(n, tm)

    tgt = target.reshape(n, 1).astype(jnp.int32)
    if n_pad != n:
        # Padded rows get target == padding_idx -> they contribute exactly 0.
        x = jnp.pad(x, ((0, n_pad - n), (0, 0)))
        tgt = jnp.pad(tgt, ((0, n_pad - n), (0, 0)), constant_values=padding_idx)

    kernel = functools.partial(
        label_smoothing_kernel,
        smooth_val=float(smooth_val),
        confidence=float(confidence),
        c_const=float(c_const),
        padding_idx=int(padding_idx),
    )

    out = pl.pallas_call(
        kernel,
        out_shape=jax.ShapeDtypeStruct((1, 1), jnp.float32),
        grid=(n_pad // tm,),
        in_specs=[
            pl.BlockSpec((tm, v), lambda i: (i, 0)),
            pl.BlockSpec((tm, 1), lambda i: (i, 0)),
        ],
        out_specs=pl.BlockSpec((1, 1), lambda i: (0, 0)),
        scratch_shapes=[pltpu.VMEM((1, v), jnp.float32)],
        compiler_params=pltpu.CompilerParams(dimension_semantics=("arbitrary",)),
    )(x, tgt)
    return out[0, 0]


def _reference_loss(x, target, padding_idx, smoothing):
    """Pure-JAX reference matching the PyTorch module's semantics."""
    n, v = x.shape
    confidence = 1.0 - smoothing
    smooth_val = smoothing / (v - 2)
    cols = jnp.arange(v)[None, :]
    tgt = target[:, None]
    td = jnp.where(cols == tgt, confidence, smooth_val)
    td = jnp.where(cols == padding_idx, 0.0, td)
    td = jnp.where(tgt == padding_idx, 0.0, td)
    return jnp.sum(jnp.where(td > 0.0, td * (jnp.log(td) - x), 0.0))


if __name__ == "__main__":
    N, V = 16, 128
    PADDING_IDX = 0
    SMOOTHING = 0.1

    key = jax.random.PRNGKey(0)
    k_logits, k_tgt = jax.random.split(key)

    logits = jax.random.normal(k_logits, (N, V), dtype=jnp.float32)
    x = jax.nn.log_softmax(logits, axis=-1)  # module expects log-probabilities
    target = jax.random.randint(k_tgt, (N,), 0, V, dtype=jnp.int32)
    # force a couple of padding targets so the row-masking path is exercised
    target = target.at[3].set(PADDING_IDX).at[7].set(PADDING_IDX)

    loss = label_smoothing_loss(x, target, padding_idx=PADDING_IDX,
                                smoothing=SMOOTHING)
    loss = jax.block_until_ready(loss)

    ref = _reference_loss(x, target, PADDING_IDX, SMOOTHING)
    assert jnp.allclose(loss, ref, rtol=1e-5, atol=1e-4), (loss, ref)

    print("KERNEL_OK")
</pallas_src>

<mosaic_0001>
module attributes {stable_mosaic.version = 11 : i64} {
  func.func @label_smoothing_kernel(%arg0: i32, %arg1: memref<16x128xf32, #tpu.memory_space<vmem>>, %arg2: memref<16x1xi32, #tpu.memory_space<vmem>>, %arg3: memref<1x1xf32, #tpu.memory_space<vmem>>, %arg4: memref<1x128xf32, #tpu.memory_space<vmem>>) attributes {dimension_semantics = [#tpu.dimension_semantics<arbitrary>], iteration_bounds = array<i64: 1>, scalar_prefetch = 0 : i64, scratch_operands = 1 : i64, tpu.core_type = #tpu.core_type<tc>, window_params = [{transform_indices = @transform_0, window_bounds = array<i64: 16, 128>}, {transform_indices = @transform_1, window_bounds = array<i64: 16, 1>}, {pipeline_mode = #tpu.pipeline_mode<synchronous>, transform_indices = @transform_2, window_bounds = array<i64: 1, 1>}]} {
    %c0_i32 = arith.constant 0 : i32
    %0 = arith.cmpi eq, %arg0, %c0_i32 : i32
    %1 = arith.extui %0 : i1 to i32
    %c0_i32_0 = arith.constant 0 : i32
    %2 = arith.cmpi ne, %1, %c0_i32_0 : i32
    scf.if %2 {
      %cst_17 = arith.constant 0.000000e+00 : f32
      %35 = vector.broadcast %cst_17 : f32 to vector<1x128xf32>
      %c0_18 = arith.constant 0 : index
      %c0_19 = arith.constant 0 : index
      %36 = vector.load %arg4[%c0_18, %c0_19] : memref<1x128xf32, #tpu.memory_space<vmem>>, vector<1x128xf32>
      tpu.vector_store %arg4[%c0_18, %c0_19], %35 {strides = array<i32>} : memref<1x128xf32, #tpu.memory_space<vmem>>, vector<1x128xf32>,
      %cst_20 = arith.constant 0.000000e+00 : f32
      %37 = vector.broadcast %cst_20 : f32 to vector<1x1xf32>
      %c0_21 = arith.constant 0 : index
      %c0_22 = arith.constant 0 : index
      %38 = vector.load %arg3[%c0_21, %c0_22] : memref<1x1xf32, #tpu.memory_space<vmem>>, vector<1x1xf32>
      tpu.vector_store %arg3[%c0_21, %c0_22], %37 {strides = array<i32>} : memref<1x1xf32, #tpu.memory_space<vmem>>, vector<1x1xf32>,
    } else {
    }
    %c0 = arith.constant 0 : index
    %c0_1 = arith.constant 0 : index
    %3 = vector.load %arg1[%c0, %c0_1] : memref<16x128xf32, #tpu.memory_space<vmem>>, vector<16x128xf32>
    %c0_2 = arith.constant 0 : index
    %c0_3 = arith.constant 0 : index
    %4 = vector.load %arg2[%c0_2, %c0_3] : memref<16x1xi32, #tpu.memory_space<vmem>>, vector<16x1xi32>
    %5 = tpu.iota {dimensions = array<i32: 1>} : vector<16x128xi32>
    %c0_i32_4 = arith.constant 0 : i32
    %6 = vector.broadcast %c0_i32_4 : i32 to vector<16x1xi32>
    %7 = arith.cmpi ne, %4, %6 : vector<16x1xi32>
    %8 = vector.broadcast %4 : vector<16x1xi32> to vector<16x128xi32>
    %9 = arith.cmpi eq, %5, %8 : vector<16x128xi32>
    %10 = vector.broadcast %7 : vector<16x1xi1> to vector<16x128xi1>
    %11 = arith.andi %9, %10 : vector<16x128xi1>
    %c0_i32_5 = arith.constant 0 : i32
    %12 = vector.broadcast %c0_i32_5 : i32 to vector<16x128xi32>
    %13 = arith.cmpi ne, %5, %12 : vector<16x128xi32>
    %14 = vector.broadcast %7 : vector<16x1xi1> to vector<16x128xi1>
    %15 = arith.andi %14, %13 : vector<16x128xi1>
    %cst = arith.constant -0.89920634 : f32
    %16 = vector.broadcast %cst : f32 to vector<16x128xf32>
    %17 = arith.mulf %16, %3 : vector<16x128xf32>
    %cst_6 = arith.constant -0.808711171 : f32
    %18 = vector.broadcast %cst_6 : f32 to vector<16x128xf32>
    %19 = arith.addf %18, %17 : vector<16x128xf32>
    %cst_7 = arith.constant 0.000000e+00 : f32
    %20 = vector.broadcast %cst_7 : f32 to vector<16x128xf32>
    %21 = arith.select %11, %19, %20 : vector<16x128xi1>, vector<16x128xf32>
    %cst_8 = arith.constant -7.93650805E-4 : f32
    %22 = vector.broadcast %cst_8 : f32 to vector<16x128xf32>
    %23 = arith.mulf %22, %3 : vector<16x128xf32>
    %cst_9 = arith.constant 0.000000e+00 : f32
    %24 = vector.broadcast %cst_9 : f32 to vector<16x128xf32>
    %25 = arith.select %15, %23, %24 : vector<16x128xi1>, vector<16x128xf32>
    %26 = arith.addf %21, %25 : vector<16x128xf32>
    %c0_10 = arith.constant 0 : index
    %c0_11 = arith.constant 0 : index
    %27 = vector.load %arg4[%c0_10, %c0_11] : memref<1x128xf32, #tpu.memory_space<vmem>>, vector<1x128xf32>
    %cst_12 = arith.constant dense<0.000000e+00> : vector<128xf32>
    %28 = vector.multi_reduction <add>, %26, %cst_12 [0] : vector<16x128xf32> to vector<128xf32>
    %29 = vector.shape_cast %28 : vector<128xf32> to vector<1x128xf32>
    %30 = arith.addf %27, %29 : vector<1x128xf32>
    %c0_13 = arith.constant 0 : index
    %c0_14 = arith.constant 0 : index
    %31 = vector.load %arg4[%c0_13, %c0_14] : memref<1x128xf32, #tpu.memory_space<vmem>>, vector<1x128xf32>
    tpu.vector_store %arg4[%c0_13, %c0_14], %30 {strides = array<i32>} : memref<1x128xf32, #tpu.memory_space<vmem>>, vector<1x128xf32>,
    %c0_i32_15 = arith.constant 0 : i32
    %32 = arith.cmpi eq, %arg0, %c0_i32_15 : i32
    %33 = arith.extui %32 : i1 to i32
    %c0_i32_16 = arith.constant 0 : i32
    %34 = arith.cmpi ne, %33, %c0_i32_16 : i32
    scf.if %34 {
      %c0_17 = arith.constant 0 : index
      %c0_18 = arith.constant 0 : index
      %35 = vector.load %arg4[%c0_17, %c0_18] : memref<1x128xf32, #tpu.memory_space<vmem>>, vector<1x128xf32>
      %36 = vector.shape_cast %35 : vector<1x128xf32> to vector<1x1x128xf32>
      %cst_19 = arith.constant dense<0.000000e+00> : vector<1xf32>
      %37 = vector.multi_reduction <add>, %36, %cst_19 [1, 2] : vector<1x1x128xf32> to vector<1xf32>
      %38 = vector.shape_cast %37 : vector<1xf32> to vector<1x1x1xf32>
      %39 = vector.extract %38[0, 0, 0] : f32 from vector<1x1x1xf32>
      %40 = vector.broadcast %39 : f32 to vector<1x1xf32>
      %c0_20 = arith.constant 0 : index
      %c0_21 = arith.constant 0 : index
      %41 = vector.load %arg3[%c0_20, %c0_21] : memref<1x1xf32, #tpu.memory_space<vmem>>, vector<1x1xf32>
      tpu.vector_store %arg3[%c0_20, %c0_21], %40 {strides = array<i32>} : memref<1x1xf32, #tpu.memory_space<vmem>>, vector<1x1xf32>,
    } else {
    }
    return
  }
  func.func @transform_0(%arg0: i32) -> (i32, i32) {
    %c0_i32 = arith.constant 0 : i32
    %c0_i32_0 = arith.constant 0 : i32
    return %arg0, %c0_i32 : i32, i32
  }
  func.func @transform_1(%arg0: i32) -> (i32, i32) {
    %c0_i32 = arith.constant 0 : i32
    %c0_i32_0 = arith.constant 0 : i32
    return %arg0, %c0_i32 : i32, i32
  }
  func.func @transform_2(%arg0: i32) -> (i32, i32) {
    %c0_i32 = arith.constant 0 : i32
    %c0_i32_0 = arith.constant 0 : i32
    %c0_i32_1 = arith.constant 0 : i32
    return %c0_i32, %c0_i32_0 : i32, i32
  }
}

</mosaic_0001>

<bundles_post_ra>
// kernel: tpu_custom_call.1
= control target key start
LH: loop header
LB: loop body
LE: loop exit
PB: predicated region body
PF: predicated region fallthrough
CT: control target
= control target key end

     0   :  { %s180_s0 = inlined_call_operand.vmem [shape: f32[16,128], index: 0, kind: input, shape index: {}]   ;;  %s181_s1 = inlined_call_operand.vmem [shape: s32[16,1], index: 1, kind: input, shape index: {}]   ;;  %s182_s2 = inlined_call_operand.hbm [shape: f32[1,1], index: 2, kind: output, shape index: {}]  }
   0x1   :  { %v21_v0 = vld [vmem:[%s181_s1] sm:$0xff] }
   0x2   :  { %7 = vsyncpa [#allocation4], 0  ;;  %v139_v1 = vmov 0   ;;  %vm25_vm0 = vcmp.ne.s32.totalorder %v21_v0, 0  ;;  %v22_v3 = vld [vmem:[%s181_s1 + $0x8] sm:$0xff]  ;;  %v140_v5 = vmov 0.0   ;;  %v23_v6 = vlaneseq }
   0x3   :  { %111 = vset.pattern.permute.xlu0 %v139_v1  ;;  %112 = vset.pattern.permute.xlu1 %v139_v1  ;;  %v35_v2 = vsel %vm25_vm0, 1, %v139_v1  ;;  %vm26_vm1 = vcmp.ne.s32.totalorder %v22_v3, 0  ;;  %16 = vst [vmem:[#allocation2] sm:$0x1] %v140_v5  ;;  %v19_v9 = vld [vmem:[%s180_s0] sm:$0xff]  ;;  %v20_v11 = vld [vmem:[%s180_s0 + $0x8] sm:$0xff] }
   0x4   :  { %28 = vperm.xlu0 %111, %v21_v0   ;;  %38 = vperm.xlu1 %112, %v35_v2   ;;  %v36_v4 = vsel %vm26_vm1, 1, %v139_v1  ;;  %v24_v7 = vand.u32 127, %v23_v6  ;;  %v50_v12 = vmul.f32 -0.89920634, %v19_v9  ;;  %v51_v13 = vmul.f32 -0.89920634, %v20_v11 }
   0x5   :  { %v56_v16 = vmul.f32 -0.0007936508, %v19_v9  ;;  %v57_v20 = vmul.f32 -0.0007936508, %v20_v11  ;;  %vm76_vm11 = vcmask 1040384   ;;  %vm17_vm12 = vcmask 0  }
   0x6   :  { %vm47_vm4 = vcmp.ne.s32.totalorder %v24_v7, 0  ;;  %v52_v15 = vadd.f32 -0.8087112, %v50_v12  ;;  %v53_v18 = vadd.f32 -0.8087112, %v51_v13  ;;  %s141_s0 = smov [#allocation3]  }
   0x7   :  { %18 = vst.msk [vmem:[#allocation3] sm:$0x1] %vm17_vm12, %v140_v5  ;;  %s95_s1 = sshll.u32 %s141_s0, 4  ;;  %s97_s19 = sshll.u32 %s182_s2, 4  ;;  %s96_s1 = int_to_ptr.vmem [resolvable:$true] %s95_s1  ;;  %s98_s19 = int_to_ptr.hbm [resolvable:$true] %s97_s19 }
   0xa   :  { %v62_v33 = vld [vmem:[#allocation2] sm:$0x1] }
   0xc   :  { %31 = vperm.xlu0 %111, %v22_v3   ;;  %41 = vperm.xlu1 %112, %v36_v4  }
  0x76   :  { %v29_v8 = vpop.permute.xlu0 %28  ;;  %v39_v10 = vpop.permute.xlu1 %38 }
  0x77   :  { %vm33_vm2 = vcmp.eq.s32.totalorder %v24_v7, %v29_v8  ;;  %vm43_vm3 = vcmp.eq.s32.totalorder %v39_v10, 1 }
  0x78   :  { %vm169_vm5 = vmand %vm33_vm2, %vm43_vm3 }
  0x79   :  { %vm48_vm6 = vmand %vm43_vm3, %vm47_vm4  ;;  %v54_v21 = vsel %vm169_vm5, %v52_v15, 0.0 }
  0x7a   :  { %v58_v22 = vsel %vm48_vm6, %v56_v16, 0.0 }
  0x7b   :  { %v60_v25 = vadd.f32 %v58_v22, %v54_v21 }
  0x7e   :  { %v32_v17 = vpop.permute.xlu0 %31  ;;  %v42_v19 = vpop.permute.xlu1 %41 }
  0x7f   :  { %vm34_vm7 = vcmp.eq.s32.totalorder %v24_v7, %v32_v17  ;;  %vm44_vm8 = vcmp.eq.s32.totalorder %v42_v19, 1 }
  0x80   :  { %vm46_vm9 = vmand %vm34_vm7, %vm44_vm8 }
  0x81   :  { %vm49_vm10 = vmand %vm44_vm8, %vm47_vm4  ;;  %v55_v23 = vsel %vm46_vm9, %v53_v18, 0.0 }
  0x82   :  { %v59_v24 = vsel %vm49_vm10, %v57_v20, 0.0 }
  0x83   :  { %v61_v26 = vadd.f32 %v59_v24, %v55_v23 }
  0x85   :  { %v63_v27 = vadd.f32 %v61_v26, %v60_v25 }
  0x87   :  { %v64_v28 = vrot.slane %v63_v27, 4 }
  0x89   :  { %v65_v29 = vadd.f32 %v64_v28, %v63_v27 }
  0x8b   :  { %v66_v30 = vrot.slane %v65_v29, 2 }
  0x8d   :  { %v67_v31 = vadd.f32 %v66_v30, %v65_v29 }
  0x8f   :  { %v68_v32 = vrot.slane %v67_v31, 1 }
  0x91   :  { %v69_v34 = vadd.f32 %v68_v32, %v67_v31 }
  0x93   :  { %v70_v35 = vadd.f32 %v69_v34, %v62_v33 }
  0x95   :  { %71 = vst [vmem:[#allocation2] sm:$0x1] %v70_v35 }
  0x9c   :  { %v75_v36 = vld [vmem:[#allocation2] sm:$0x1] }
  0x9d   :  { %v77_v37 = vsel %vm76_vm11, %v75_v36, 0.0 }
  0x9e   :  { %78 = vadd.xlane.f32.xlu2 %v77_v37 }
 0x111   :  { %v79_v38 = vpop.xlane.xlu2 %78 }
 0x112   :  { %v80_v39 = vrot.slane %v79_v38, 4 }
 0x114   :  { %v81_v40 = vadd.f32 %v80_v39, %v79_v38 }
 0x116   :  { %v82_v41 = vrot.slane %v81_v40, 2 }
 0x118   :  { %v83_v42 = vadd.f32 %v82_v41, %v81_v40 }
 0x11a   :  { %v84_v43 = vrot.slane %v83_v42, 1 }
 0x11c   :  { %v85_v44 = vadd.f32 %v84_v43, %v83_v42 }
 0x11e   :  { %106 = vpush %v85_v44 }
 0x14f   :  { %s107_s20 = spop %106 }
 0x150   :  { %v87_v45 = vstv %s107_s20 }
 0x151   :  { %89 = vst.msk [vmem:[#allocation3] sm:$0x1] %vm17_vm12, %v87_v45 }
 0x152   :  { %100 = dma.vmem_to_hbm [thread:$0]  %s96_s1, 16, %s98_s19, [#allocation4]  }
 0x153   :  { %137 = dma.done.wait [#allocation4], 16  }
 0x154   :  { %138 = vsyncadd [#allocation4], 4294967280 }
 0x155   :  { %105 = vsyncpa [#allocation4], 1 }

</bundles_post_ra>
